<compile_context>
chip_gen: v7x
topology: tpu7x:2x2x1
jax: 0.10.0
libtpu: 0.0.40
codegen_flags: <defaults>
</compile_context>

<pallas_src>
import math

import jax
import jax.numpy as jnp
from jax import lax
from jax.experimental import pallas as pl
from jax.experimental.pallas import tpu as pltpu


MASK_VALUE = -1e30  # large-negative additive mask (review: safer habit than -inf)


# ----------------------------- RoPE precompute (host-side glue, plain JAX) ---
def precompute_rope_params(head_dim, theta_base=10000.0, context_length=4096,
                           freq_config=None):
    assert head_dim % 2 == 0, "head_dim must be even"
    inv_freq = 1.0 / theta_base ** (
        jnp.arange(0, head_dim, 2, dtype=jnp.float32)[: head_dim // 2] / head_dim
    )
    if freq_config is not None:
        low_freq_wavelen = (freq_config["original_context_length"]
                            / freq_config["low_freq_factor"])
        high_freq_wavelen = (freq_config["original_context_length"]
                             / freq_config["high_freq_factor"])
        wavelen = 2.0 * jnp.pi / inv_freq
        inv_freq_llama = jnp.where(wavelen > low_freq_wavelen,
                                   inv_freq / freq_config["factor"], inv_freq)
        smooth = ((freq_config["original_context_length"] / wavelen
                   - freq_config["low_freq_factor"])
                  / (freq_config["high_freq_factor"] - freq_config["low_freq_factor"]))
        smoothed = (1 - smooth) * (inv_freq / freq_config["factor"]) + smooth * inv_freq
        is_med = (wavelen <= low_freq_wavelen) & (wavelen >= high_freq_wavelen)
        inv_freq = jnp.where(is_med, smoothed, inv_freq_llama)
    positions = jnp.arange(context_length, dtype=jnp.float32)
    angles = positions[:, None] * inv_freq[None, :]
    angles = jnp.concatenate([angles, angles], axis=1)       # (ctx, head_dim)
    return jnp.cos(angles), jnp.sin(angles)


# ----------------------------- Kernel 1: QKV projection + RoPE ---------------
def _make_proj_rope_kernel(num_heads, num_kv_groups, head_dim):
    half = head_dim // 2

    def _rope_slab(x, cos_t, sin_signed_t, n_chunks):
        # x: (ts, n_chunks*head_dim) f32.  Rotate-half per head chunk; the
        # sign (and, for q, the 1/sqrt(head_dim) scale) is folded into the
        # precomputed sin/cos tables, so this is slices + concat + 2 FMAs.
        pieces = []
        for c in range(n_chunks):
            a = c * head_dim
            pieces.append(x[:, a + half:a + head_dim])   # x2
            pieces.append(x[:, a:a + half])              # x1
        rot = jnp.concatenate(pieces, axis=1)
        return x * cos_t + rot * sin_signed_t

    def kernel(x_ref, wq_ref, wk_ref, wv_ref,
               cosq_ref, sinq_ref, cosk_ref, sink_ref,
               q_ref, k_ref, v_ref):
        x = x_ref[0]                                                   # (ts, d_in) bf16
        q = jnp.dot(x, wq_ref[...], preferred_element_type=jnp.float32)  # (ts, d_out)
        k = jnp.dot(x, wk_ref[...], preferred_element_type=jnp.float32)  # (ts, kv_dim)
        v = jnp.dot(x, wv_ref[...], preferred_element_type=jnp.float32)  # (ts, kv_dim)

        q_ref[0] = _rope_slab(q, cosq_ref[...], sinq_ref[...],
                              num_heads).astype(q_ref.dtype)
        k_ref[0] = _rope_slab(k, cosk_ref[...], sink_ref[...],
                              num_kv_groups).astype(k_ref.dtype)
        v_ref[0] = v.astype(v_ref.dtype)

    return kernel


# ----------------------------- Kernel 2: flash GQA attention + out-proj ------
def _make_flash_gqa_kernel(num_heads, num_kv_groups, head_dim, tq, tk):
    group_size = num_heads // num_kv_groups

    def kernel(q_ref, k_ref, v_ref, wo_ref, o_ref, m_sc, l_sc, acc_sc, ctx_sc):
        qi = pl.program_id(1)
        ki = pl.program_id(2)
        n_k = pl.num_programs(2)

        @pl.when(ki == 0)
        def _init():
            m_sc[...] = jnp.full(m_sc.shape, -jnp.inf, m_sc.dtype)
            l_sc[...] = jnp.zeros(l_sc.shape, l_sc.dtype)
            acc_sc[...] = jnp.zeros(acc_sc.shape, acc_sc.dtype)

        # Skip KV tiles strictly above the causal diagonal (fully masked).
        @pl.when(ki * tk < (qi + 1) * tq)
        def _compute():
            q = q_ref[0]                     # (tq, d_out)  bf16, RoPE'd & pre-scaled
            k = k_ref[0]                     # (tk, kv_dim) bf16, RoPE'd
            v = v_ref[0]                     # (tk, kv_dim) bf16

            # Causal mask for this (q-tile, kv-tile); shared by every head.
            row = lax.broadcasted_iota(jnp.int32, (tq, tk), 0)
            col = lax.broadcasted_iota(jnp.int32, (tq, tk), 1)
            keep = (ki * tk + col) <= (qi * tq + row)

            for g in range(num_kv_groups):
                kg = k[:, g * head_dim:(g + 1) * head_dim]      # (tk, hd)
                vg = v[:, g * head_dim:(g + 1) * head_dim]      # (tk, hd)
                for hh in range(group_size):
                    h = g * group_size + hh
                    qh = q[:, h * head_dim:(h + 1) * head_dim]  # (tq, hd)
                    # s = qh @ kg^T  (scale already folded into q)
                    s = lax.dot_general(qh, kg, (((1,), (1,)), ((), ())),
                                        preferred_element_type=jnp.float32)
                    s = jnp.where(keep, s, MASK_VALUE)

                    m_prev = m_sc[h]
                    m_new = jnp.maximum(m_prev,
                                        jnp.max(s, axis=-1, keepdims=True))
                    alpha = jnp.exp(m_prev - m_new)
                    p = jnp.exp(s - m_new)
                    l_sc[h] = alpha * l_sc[h] + jnp.sum(p, axis=-1, keepdims=True)
                    acc_sc[h] = alpha * acc_sc[h] + jnp.dot(
                        p.astype(v.dtype), vg,
                        preferred_element_type=jnp.float32)
                    m_sc[h] = m_new

        @pl.when(ki == n_k - 1)
        def _finalize():
            # Normalize, assemble a lane-dense (tq, d_out) context slab in
            # scratch (no per-head concatenate), then fuse the out-projection.
            for h in range(num_heads):
                inv_l = pl.reciprocal(l_sc[h], approx=True)     # EUP slot
                ctx_sc[:, h * head_dim:(h + 1) * head_dim] = acc_sc[h] * inv_l
            o_ref[0] = jnp.dot(ctx_sc[...].astype(jnp.bfloat16), wo_ref[...],
                               preferred_element_type=jnp.float32
                               ).astype(o_ref.dtype)

    return kernel


# ----------------------------- Wrapper ---------------------------------------
def _seq_tile(t):
    for cand in (512, 256, 128):
        if t % cand == 0:
            return cand
    return t  # small / ragged sequences: single full-length tile


def grouped_query_attention(x, wq, wk, wv, wo, cos, sin,
                            num_heads, num_kv_groups):
    """x: (b, T, d_in); wq/wk/wv/wo stored as (in, out); cos/sin: (ctx, hd)."""
    b, T, d_in = x.shape
    d_out = wq.shape[1]
    kv_dim = wk.shape[1]
    head_dim = d_out // num_heads
    assert kv_dim == num_kv_groups * head_dim
    assert num_heads % num_kv_groups == 0
    half = head_dim // 2

    ts = _seq_tile(T)   # projection-kernel sequence tile
    tq = _seq_tile(T)   # attention query tile
    tk = _seq_tile(T)   # attention KV tile

    # bf16 operands for the MXU (f32 accumulation inside the kernels).
    bf16 = jnp.bfloat16
    x_b = x.astype(bf16)
    wq_b, wk_b, wv_b, wo_b = (w.astype(bf16) for w in (wq, wk, wv, wo))

    # RoPE tables tiled to slab width; rotate-half sign folded into sin and
    # the 1/sqrt(head_dim) softmax scale folded into the *query* tables.
    cos_t = cos[:T].astype(jnp.float32)
    sin_t = sin[:T].astype(jnp.float32)
    sign = jnp.concatenate([-jnp.ones((half,), jnp.float32),
                            jnp.ones((half,), jnp.float32)])
    sin_s = sin_t * sign[None, :]
    q_scale = 1.0 / math.sqrt(head_dim)
    cos_q = jnp.tile(cos_t, (1, num_heads)) * q_scale          # (T, d_out)
    sin_q = jnp.tile(sin_s, (1, num_heads)) * q_scale          # (T, d_out)
    cos_k = jnp.tile(cos_t, (1, num_kv_groups))                # (T, kv_dim)
    sin_k = jnp.tile(sin_s, (1, num_kv_groups))                # (T, kv_dim)

    # ---- Kernel 1: fused QKV projection + RoPE --------------------------------
    proj_kernel = _make_proj_rope_kernel(num_heads, num_kv_groups, head_dim)
    n_s = T // ts
    q_r, k_r, v_r = pl.pallas_call(
        proj_kernel,
        out_shape=(jax.ShapeDtypeStruct((b, T, d_out), bf16),
                   jax.ShapeDtypeStruct((b, T, kv_dim), bf16),
                   jax.ShapeDtypeStruct((b, T, kv_dim), bf16)),
        grid_spec=pltpu.PrefetchScalarGridSpec(
            num_scalar_prefetch=0,
            grid=(b, n_s),
            in_specs=[
                pl.BlockSpec((1, ts, d_in), lambda i, j: (i, j, 0)),
                # Constant index_map -> weights are DMA'd once and stay resident.
                pl.BlockSpec((d_in, d_out), lambda i, j: (0, 0)),
                pl.BlockSpec((d_in, kv_dim), lambda i, j: (0, 0)),
                pl.BlockSpec((d_in, kv_dim), lambda i, j: (0, 0)),
                pl.BlockSpec((ts, d_out), lambda i, j: (j, 0)),
                pl.BlockSpec((ts, d_out), lambda i, j: (j, 0)),
                pl.BlockSpec((ts, kv_dim), lambda i, j: (j, 0)),
                pl.BlockSpec((ts, kv_dim), lambda i, j: (j, 0)),
            ],
            out_specs=[
                pl.BlockSpec((1, ts, d_out), lambda i, j: (i, j, 0)),
                pl.BlockSpec((1, ts, kv_dim), lambda i, j: (i, j, 0)),
                pl.BlockSpec((1, ts, kv_dim), lambda i, j: (i, j, 0)),
            ],
        ),
        compiler_params=pltpu.CompilerParams(
            dimension_semantics=("parallel", "parallel"),
            vmem_limit_bytes=48 * 1024 * 1024),
    )(x_b, wq_b, wk_b, wv_b, cos_q, sin_q, cos_k, sin_k)

    # ---- Kernel 2: flash-style causal GQA attention + fused output projection --
    attn_kernel = _make_flash_gqa_kernel(num_heads, num_kv_groups, head_dim, tq, tk)
    n_q = T // tq
    n_kv = T // tk
    out = pl.pallas_call(
        attn_kernel,
        out_shape=jax.ShapeDtypeStruct((b, T, d_out), jnp.float32),
        grid_spec=pltpu.PrefetchScalarGridSpec(
            num_scalar_prefetch=0,
            grid=(b, n_q, n_kv),
            in_specs=[
                pl.BlockSpec((1, tq, d_out), lambda i, qi, ki: (i, qi, 0)),
                pl.BlockSpec((1, tk, kv_dim), lambda i, qi, ki: (i, ki, 0)),
                pl.BlockSpec((1, tk, kv_dim), lambda i, qi, ki: (i, ki, 0)),
                pl.BlockSpec((d_out, d_out), lambda i, qi, ki: (0, 0)),
            ],
            out_specs=pl.BlockSpec((1, tq, d_out), lambda i, qi, ki: (i, qi, 0)),
            scratch_shapes=[
                pltpu.VMEM((num_heads, tq, 1), jnp.float32),        # running max
                pltpu.VMEM((num_heads, tq, 1), jnp.float32),        # running sum
                pltpu.VMEM((num_heads, tq, head_dim), jnp.float32),  # unnormalized ctx
                pltpu.VMEM((tq, d_out), jnp.float32),               # context slab
            ],
        ),
        compiler_params=pltpu.CompilerParams(
            dimension_semantics=("parallel", "parallel", "arbitrary"),
            vmem_limit_bytes=48 * 1024 * 1024),
    )(q_r, k_r, v_r, wo_b)
    return out


# ----------------------------- Pure-JAX reference (for sanity check) ---------
def _reference(x, wq, wk, wv, wo, cos, sin, num_heads, num_kv_groups):
    b, T, d_in = x.shape
    d_out = wq.shape[1]
    head_dim = d_out // num_heads
    group_size = num_heads // num_kv_groups

    def rope(t):  # t: (b, H, T, hd)
        x1, x2 = t[..., :head_dim // 2], t[..., head_dim // 2:]
        rot = jnp.concatenate([-x2, x1], axis=-1)
        return t * cos[None, None, :T, :] + rot * sin[None, None, :T, :]

    q = (x @ wq).reshape(b, T, num_heads, head_dim).transpose(0, 2, 1, 3)
    k = (x @ wk).reshape(b, T, num_kv_groups, head_dim).transpose(0, 2, 1, 3)
    v = (x @ wv).reshape(b, T, num_kv_groups, head_dim).transpose(0, 2, 1, 3)
    q, k = rope(q), rope(k)
    k = jnp.repeat(k, group_size, axis=1)
    v = jnp.repeat(v, group_size, axis=1)
    s = jnp.einsum("bhqd,bhkd->bhqk", q, k)
    mask = jnp.triu(jnp.ones((T, T), bool), k=1)
    s = jnp.where(mask[None, None], -jnp.inf, s)
    p = jax.nn.softmax(s / math.sqrt(head_dim), axis=-1)
    ctx = jnp.einsum("bhqk,bhkd->bhqd", p, v).transpose(0, 2, 1, 3).reshape(b, T, d_out)
    return ctx @ wo


# ----------------------------- Main -------------------------------------------
if __name__ == "__main__":
    batch = 2
    num_tokens = 8
    d_in = 32
    d_out = 32
    num_heads = 4
    num_kv_groups = 2
    head_dim = d_out // num_heads
    context_length = 64
    rope_base = 10000.0

    key = jax.random.PRNGKey(0)
    kx, kq, kk, kv, ko = jax.random.split(key, 5)

    x = jax.random.normal(kx, (batch, num_tokens, d_in), dtype=jnp.float32)
    # nn.Linear(in, out, bias=False): y = x @ W^T; weights stored as (in, out).
    wq = jax.random.normal(kq, (d_in, d_out), dtype=jnp.float32) * 0.02
    wk = jax.random.normal(kk, (d_in, num_kv_groups * head_dim), dtype=jnp.float32) * 0.02
    wv = jax.random.normal(kv, (d_in, num_kv_groups * head_dim), dtype=jnp.float32) * 0.02
    wo = jax.random.normal(ko, (d_out, d_out), dtype=jnp.float32) * 0.02

    cos, sin = precompute_rope_params(head_dim, rope_base, context_length)

    out = grouped_query_attention(x, wq, wk, wv, wo, cos, sin,
                                  num_heads, num_kv_groups)
    out = jax.block_until_ready(out)

    ref = _reference(x, wq, wk, wv, wo, cos, sin, num_heads, num_kv_groups)
    assert out.shape == (batch, num_tokens, d_out)
    max_diff = float(jnp.max(jnp.abs(out - ref)))
    assert jnp.allclose(out, ref, atol=2e-3, rtol=2e-2), (
        f"mismatch vs reference, max abs diff = {max_diff}")

    print("KERNEL_OK")
</pallas_src>

<mosaic_0001>
module attributes {stable_mosaic.version = 11 : i64} {
  func.func @kernel(%arg0: i32, %arg1: i32, %arg2: memref<1x8x32xbf16, #tpu.memory_space<vmem>>, %arg3: memref<32x32xbf16, #tpu.memory_space<vmem>>, %arg4: memref<32x16xbf16, #tpu.memory_space<vmem>>, %arg5: memref<32x16xbf16, #tpu.memory_space<vmem>>, %arg6: memref<8x32xf32, #tpu.memory_space<vmem>>, %arg7: memref<8x32xf32, #tpu.memory_space<vmem>>, %arg8: memref<8x16xf32, #tpu.memory_space<vmem>>, %arg9: memref<8x16xf32, #tpu.memory_space<vmem>>, %arg10: memref<1x8x32xbf16, #tpu.memory_space<vmem>>, %arg11: memref<1x8x16xbf16, #tpu.memory_space<vmem>>, %arg12: memref<1x8x16xbf16, #tpu.memory_space<vmem>>) attributes {dimension_semantics = [#tpu.dimension_semantics<parallel>, #tpu.dimension_semantics<parallel>], iteration_bounds = array<i64: 2, 1>, scalar_prefetch = 0 : i64, scratch_operands = 0 : i64, tpu.core_type = #tpu.core_type<tc>, window_params = [{transform_indices = @transform_0, window_bounds = array<i64: 1, 8, 32>}, {pipeline_mode = #tpu.pipeline_mode<synchronous>, transform_indices = @transform_1, window_bounds = array<i64: 32, 32>}, {pipeline_mode = #tpu.pipeline_mode<synchronous>, transform_indices = @transform_2, window_bounds = array<i64: 32, 16>}, {pipeline_mode = #tpu.pipeline_mode<synchronous>, transform_indices = @transform_3, window_bounds = array<i64: 32, 16>}, {transform_indices = @transform_4, window_bounds = array<i64: 8, 32>}, {transform_indices = @transform_5, window_bounds = array<i64: 8, 32>}, {transform_indices = @transform_6, window_bounds = array<i64: 8, 16>}, {transform_indices = @transform_7, window_bounds = array<i64: 8, 16>}, {transform_indices = @transform_8, window_bounds = array<i64: 1, 8, 32>}, {transform_indices = @transform_9, window_bounds = array<i64: 1, 8, 16>}, {transform_indices = @transform_10, window_bounds = array<i64: 1, 8, 16>}]} {
    %c0 = arith.constant 0 : index
    %c0_0 = arith.constant 0 : index
    %c0_1 = arith.constant 0 : index
    %0 = vector.load %arg2[%c0, %c0_0, %c0_1] : memref<1x8x32xbf16, #tpu.memory_space<vmem>>, vector<1x8x32xbf16>
    %1 = vector.shape_cast %0 : vector<1x8x32xbf16> to vector<8x32xbf16>
    %c0_2 = arith.constant 0 : index
    %c0_3 = arith.constant 0 : index
    %2 = vector.load %arg3[%c0_2, %c0_3] : memref<32x32xbf16, #tpu.memory_space<vmem>>, vector<32x32xbf16>
    %cst = arith.constant dense<0.000000e+00> : vector<8x32xf32>
    %3 = tpu.matmul %1, %2, %cst {dimension_numbers = #tpu.dot_dimension_numbers<[1], [0], [0], [1], [0, 0, 1, 1], [], []>} : vector<8x32xbf16>, vector<32x32xbf16>, vector<8x32xf32> -> vector<8x32xf32>
    %c0_4 = arith.constant 0 : index
    %c0_5 = arith.constant 0 : index
    %4 = vector.load %arg4[%c0_4, %c0_5] : memref<32x16xbf16, #tpu.memory_space<vmem>>, vector<32x16xbf16>
    %cst_6 = arith.constant dense<0.000000e+00> : vector<8x16xf32>
    %5 = tpu.matmul %1, %4, %cst_6 {dimension_numbers = #tpu.dot_dimension_numbers<[1], [0], [0], [1], [0, 0, 1, 1], [], []>} : vector<8x32xbf16>, vector<32x16xbf16>, vector<8x16xf32> -> vector<8x16xf32>
    %c0_7 = arith.constant 0 : index
    %c0_8 = arith.constant 0 : index
    %6 = vector.load %arg5[%c0_7, %c0_8] : memref<32x16xbf16, #tpu.memory_space<vmem>>, vector<32x16xbf16>
    %cst_9 = arith.constant dense<0.000000e+00> : vector<8x16xf32>
    %7 = tpu.matmul %1, %6, %cst_9 {dimension_numbers = #tpu.dot_dimension_numbers<[1], [0], [0], [1], [0, 0, 1, 1], [], []>} : vector<8x32xbf16>, vector<32x16xbf16>, vector<8x16xf32> -> vector<8x16xf32>
    %c0_10 = arith.constant 0 : index
    %c0_11 = arith.constant 0 : index
    %8 = vector.load %arg6[%c0_10, %c0_11] : memref<8x32xf32, #tpu.memory_space<vmem>>, vector<8x32xf32>
    %c0_12 = arith.constant 0 : index
    %c0_13 = arith.constant 0 : index
    %9 = vector.load %arg7[%c0_12, %c0_13] : memref<8x32xf32, #tpu.memory_space<vmem>>, vector<8x32xf32>
    %10 = vector.extract_strided_slice %3 {offsets = [0, 4], sizes = [8, 4], strides = [1, 1]} : vector<8x32xf32> to vector<8x4xf32>
    %11 = vector.extract_strided_slice %3 {offsets = [0, 0], sizes = [8, 4], strides = [1, 1]} : vector<8x32xf32> to vector<8x4xf32>
    %12 = vector.extract_strided_slice %3 {offsets = [0, 12], sizes = [8, 4], strides = [1, 1]} : vector<8x32xf32> to vector<8x4xf32>
    %13 = vector.extract_strided_slice %3 {offsets = [0, 8], sizes = [8, 4], strides = [1, 1]} : vector<8x32xf32> to vector<8x4xf32>
    %14 = vector.extract_strided_slice %3 {offsets = [0, 20], sizes = [8, 4], strides = [1, 1]} : vector<8x32xf32> to vector<8x4xf32>
    %15 = vector.extract_strided_slice %3 {offsets = [0, 16], sizes = [8, 4], strides = [1, 1]} : vector<8x32xf32> to vector<8x4xf32>
    %16 = vector.extract_strided_slice %3 {offsets = [0, 28], sizes = [8, 4], strides = [1, 1]} : vector<8x32xf32> to vector<8x4xf32>
    %17 = vector.extract_strided_slice %3 {offsets = [0, 24], sizes = [8, 4], strides = [1, 1]} : vector<8x32xf32> to vector<8x4xf32>
    %18 = tpu.concatenate %10, %11, %12, %13, %14, %15, %16, %17 in 1 : vector<8x4xf32>, vector<8x4xf32>, vector<8x4xf32>, vector<8x4xf32>, vector<8x4xf32>, vector<8x4xf32>, vector<8x4xf32>, vector<8x4xf32> -> vector<8x32xf32>
    %19 = arith.mulf %3, %8 : vector<8x32xf32>
    %20 = arith.mulf %18, %9 : vector<8x32xf32>
    %21 = arith.addf %19, %20 : vector<8x32xf32>
    %22 = arith.truncf %21 : vector<8x32xf32> to vector<8x32xbf16>
    %c0_14 = arith.constant 0 : index
    %c0_15 = arith.constant 0 : index
    %c0_16 = arith.constant 0 : index
    %23 = vector.load %arg10[%c0_14, %c0_15, %c0_16] : memref<1x8x32xbf16, #tpu.memory_space<vmem>>, vector<1x8x32xbf16>
    %24 = vector.shape_cast %23 : vector<1x8x32xbf16> to vector<8x32xbf16>
    %25 = vector.shape_cast %22 : vector<8x32xbf16> to vector<1x8x32xbf16>
    tpu.vector_store %arg10[%c0_14, %c0_15, %c0_16], %25 {strides = array<i32>} : memref<1x8x32xbf16, #tpu.memory_space<vmem>>, vector<1x8x32xbf16>,
    %c0_17 = arith.constant 0 : index
    %c0_18 = arith.constant 0 : index
    %26 = vector.load %arg8[%c0_17, %c0_18] : memref<8x16xf32, #tpu.memory_space<vmem>>, vector<8x16xf32>
    %c0_19 = arith.constant 0 : index
    %c0_20 = arith.constant 0 : index
    %27 = vector.load %arg9[%c0_19, %c0_20] : memref<8x16xf32, #tpu.memory_space<vmem>>, vector<8x16xf32>
    %28 = vector.extract_strided_slice %5 {offsets = [0, 4], sizes = [8, 4], strides = [1, 1]} : vector<8x16xf32> to vector<8x4xf32>
    %29 = vector.extract_strided_slice %5 {offsets = [0, 0], sizes = [8, 4], strides = [1, 1]} : vector<8x16xf32> to vector<8x4xf32>
    %30 = vector.extract_strided_slice %5 {offsets = [0, 12], sizes = [8, 4], strides = [1, 1]} : vector<8x16xf32> to vector<8x4xf32>
    %31 = vector.extract_strided_slice %5 {offsets = [0, 8], sizes = [8, 4], strides = [1, 1]} : vector<8x16xf32> to vector<8x4xf32>
    %32 = tpu.concatenate %28, %29, %30, %31 in 1 : vector<8x4xf32>, vector<8x4xf32>, vector<8x4xf32>, vector<8x4xf32> -> vector<8x16xf32>
    %33 = arith.mulf %5, %26 : vector<8x16xf32>
    %34 = arith.mulf %32, %27 : vector<8x16xf32>
    %35 = arith.addf %33, %34 : vector<8x16xf32>
    %36 = arith.truncf %35 : vector<8x16xf32> to vector<8x16xbf16>
    %c0_21 = arith.constant 0 : index
    %c0_22 = arith.constant 0 : index
    %c0_23 = arith.constant 0 : index
    %37 = vector.load %arg11[%c0_21, %c0_22, %c0_23] : memref<1x8x16xbf16, #tpu.memory_space<vmem>>, vector<1x8x16xbf16>
    %38 = vector.shape_cast %37 : vector<1x8x16xbf16> to vector<8x16xbf16>
    %39 = vector.shape_cast %36 : vector<8x16xbf16> to vector<1x8x16xbf16>
    tpu.vector_store %arg11[%c0_21, %c0_22, %c0_23], %39 {strides = array<i32>} : memref<1x8x16xbf16, #tpu.memory_space<vmem>>, vector<1x8x16xbf16>,
    %40 = arith.truncf %7 : vector<8x16xf32> to vector<8x16xbf16>
    %c0_24 = arith.constant 0 : index
    %c0_25 = arith.constant 0 : index
    %c0_26 = arith.constant 0 : index
    %41 = vector.load %arg12[%c0_24, %c0_25, %c0_26] : memref<1x8x16xbf16, #tpu.memory_space<vmem>>, vector<1x8x16xbf16>
    %42 = vector.shape_cast %41 : vector<1x8x16xbf16> to vector<8x16xbf16>
    %43 = vector.shape_cast %40 : vector<8x16xbf16> to vector<1x8x16xbf16>
    tpu.vector_store %arg12[%c0_24, %c0_25, %c0_26], %43 {strides = array<i32>} : memref<1x8x16xbf16, #tpu.memory_space<vmem>>, vector<1x8x16xbf16>,
    return
  }
  func.func @transform_0(%arg0: i32, %arg1: i32) -> (i32, i32, i32) {
    %c0_i32 = arith.constant 0 : i32
    %c0_i32_0 = arith.constant 0 : i32
    return %arg0, %arg1, %c0_i32 : i32, i32, i32
  }
  func.func @transform_1(%arg0: i32, %arg1: i32) -> (i32, i32) {
    %c0_i32 = arith.constant 0 : i32
    %c0_i32_0 = arith.constant 0 : i32
    %c0_i32_1 = arith.constant 0 : i32
    return %c0_i32, %c0_i32_0 : i32, i32
  }
  func.func @transform_2(%arg0: i32, %arg1: i32) -> (i32, i32) {
    %c0_i32 = arith.constant 0 : i32
    %c0_i32_0 = arith.constant 0 : i32
    %c0_i32_1 = arith.constant 0 : i32
    return %c0_i32, %c0_i32_0 : i32, i32
  }
  func.func @transform_3(%arg0: i32, %arg1: i32) -> (i32, i32) {
    %c0_i32 = arith.constant 0 : i32
    %c0_i32_0 = arith.constant 0 : i32
    %c0_i32_1 = arith.constant 0 : i32
    return %c0_i32, %c0_i32_0 : i32, i32
  }
  func.func @transform_4(%arg0: i32, %arg1: i32) -> (i32, i32) {
    %c0_i32 = arith.constant 0 : i32
    %c0_i32_0 = arith.constant 0 : i32
    return %arg1, %c0_i32 : i32, i32
  }
  func.func @transform_5(%arg0: i32, %arg1: i32) -> (i32, i32) {
    %c0_i32 = arith.constant 0 : i32
    %c0_i32_0 = arith.constant 0 : i32
    return %arg1, %c0_i32 : i32, i32
  }
  func.func @transform_6(%arg0: i32, %arg1: i32) -> (i32, i32) {
    %c0_i32 = arith.constant 0 : i32
    %c0_i32_0 = arith.constant 0 : i32
    return %arg1, %c0_i32 : i32, i32
  }
  func.func @transform_7(%arg0: i32, %arg1: i32) -> (i32, i32) {
    %c0_i32 = arith.constant 0 : i32
    %c0_i32_0 = arith.constant 0 : i32
    return %arg1, %c0_i32 : i32, i32
  }
  func.func @transform_8(%arg0: i32, %arg1: i32) -> (i32, i32, i32) {
    %c0_i32 = arith.constant 0 : i32
    %c0_i32_0 = arith.constant 0 : i32
    return %arg0, %arg1, %c0_i32 : i32, i32, i32
  }
  func.func @transform_9(%arg0: i32, %arg1: i32) -> (i32, i32, i32) {
    %c0_i32 = arith.constant 0 : i32
    %c0_i32_0 = arith.constant 0 : i32
    return %arg0, %arg1, %c0_i32 : i32, i32, i32
  }
  func.func @transform_10(%arg0: i32, %arg1: i32) -> (i32, i32, i32) {
    %c0_i32 = arith.constant 0 : i32
    %c0_i32_0 = arith.constant 0 : i32
    return %arg0, %arg1, %c0_i32 : i32, i32, i32
  }
}

</mosaic_0001>

<bundles_post_ra>
// kernel: tpu_custom_call.1
= control target key start
LH: loop header
LB: loop body
LE: loop exit
PB: predicated region body
PF: predicated region fallthrough
CT: control target
= control target key end

     0   :  { %s1516_s0 = inlined_call_operand.vmem [shape: bf16[2,8,32], index: 0, kind: input, shape index: {}]   ;;  %s1517_s1 = inlined_call_operand.vmem [shape: bf16[32,32], index: 1, kind: input, shape index: {}]   ;;  %s1518_s2 = inlined_call_operand.vmem [shape: bf16[32,16], index: 2, kind: input, shape index: {}]   ;;  %s1519_s3 = inlined_call_operand.vmem [shape: bf16[32,16], index: 3, kind: input, shape index: {}]   ;;  %s1520_s4 = inlined_call_operand.vmem [shape: f32[8,32], index: 4, kind: input, shape index: {}]   ;;  %s1521_s5 = inlined_call_operand.vmem [shape: f32[8,32], index: 5, kind: input, shape index: {}]   ;;  %s1522_s6 = inlined_call_operand.vmem [shape: f32[8,16], index: 6, kind: input, shape index: {}]   ;;  %s1523_s7 = inlined_call_operand.vmem [shape: f32[8,16], index: 7, kind: input, shape index: {}]   ;;  %s1524_s8 = inlined_call_operand.hbm [shape: bf16[2,8,32], index: 8, kind: output, shape index: {0}]   ;;  %s1525_s9 = inlined_call_operand.hbm [shape: bf16[2,8,16], index: 9, kind: output, shape index: {1}]   ;;  %s1526_s10 = inlined_call_operand.hbm [shape: bf16[2,8,16], index: 10, kind: output, shape index: {2}]  }
   0x1   :  { %1531 = sst [smem:[#allocation9_spill]] %s1516_s0 }
   0x2   :  { %1532 = sst [smem:[#allocation10_spill]] %s1517_s1 }
   0x3   :  { %1533 = sst [smem:[#allocation11_spill]] %s1518_s2 }
   0x4   :  { %1534 = sst [smem:[#allocation12_spill]] %s1519_s3 }
   0x5   :  { %1535 = sst [smem:[#allocation13_spill]] %s1520_s4 }
   0x6   :  { %1536 = sst [smem:[#allocation14_spill]] %s1521_s5 }
   0x7   :  { %16 = vsyncpa [#allocation3], 0 }
   0x8   :  { %18 = vsyncpa [#allocation3 + $0x1], 0 }
   0x9   :  { %19 = vsyncpa [#allocation5], 0 }
   0xa   :  { %21 = vsyncpa [#allocation5 + $0x1], 0  ;;  %s1280_s13 = smov 0   ;;  %s1282_s14 = smov 0  }
   0xb   :  { %s1284_s15 = smov 0   ;;  %s1286_s16 = smov 0  }
   0xc   :  { %s1288_s17 = smov 0   ;;  %s1290_s18 = smov 0  }
   0xd LB: > { %s940_s19 = sadd.s32 4294967295, %s1216_s18   ;;  %s1527_s20 = sadd.s32 4294967294, %s1216_s18   ;;  %s1216_s18 = sphi %s1290_s18, %s27_s18   ;;  %s1212_s17 = sphi %s1288_s17, %s1553_s17   ;;  %s1208_s16 = sphi %s1286_s16, %s1552_s16   ;;  %s1204_s15 = sphi %s1284_s15, %s1551_s15   ;;  %s1200_s14 = sphi %s1282_s14, %s1550_s14   ;;  %s1196_s13 = sphi %s1280_s13, %s1549_s13  }
   0xe   : > { %s39_s21 = sadd.s32 1, %s1212_s17  ;;  %s243_s22 = sadd.s32 1, %s1204_s15 }
   0xf   : > { %p41_p0 = scmp.ge.s32.totalorder %s39_s21, 2  ;;  %p253_p1 = scmp.ne.s32.totalorder %s1204_s15, %s1200_s14 }
  0x10   : > { %p254_p2 = scmp.eq.s32.totalorder %s940_s19, 1  ;;  %p259_p3 = scmp.ne.s32.totalorder %s1200_s14, %s1196_s13 }
  0x11   : > { %s1555_s21 = smov (%p41_p0, %s39_s21), 0  ;;  %p260_p5 = scmp.eq.s32.totalorder %s1527_s20, 1 }
  0x12   : > { %p1322_p4 = por %p254_p2, %p253_p1  ;;  %s238_s24 = ssub.s32 %s1212_s17, %s1555_s21 }
  0x13   : > { %p948_p6 = scmp.ge.s32.totalorder %s1216_s18, 1  ;;  %p241_p7 = scmp.eq.s32.totalorder %s238_s24, 0 }
  0x14   : > { %p1331_p8 = por %p260_p5, %p259_p3  ;;  %p381_p9 = scmp.lt.s32.totalorder %s1216_s18, 3 }
  0x15   : > { %s1337_s26 = scalar_select %p241_p7, %s1204_s15, %s243_s22  }
  0x16   : > { %p382_p10 = pnand %p948_p6, %p381_p9 }
  0x17   : > { %s1539_s1 = sld [smem:[#allocation10_spill]] (!%p382_p10)  ;;  %v1218_v1 = vmov (!%p382_p10), 0.0   ;;  %s1540_s2 = sld [smem:[#allocation11_spill]] (!%p382_p10)  ;;  %vm1219_vm0 = vmmov (!%p382_p10), 0   ;;  %vm488_vm1 = vcmask (!%p382_p10), 261120   ;;  %vm689_vm2 = vcmask (!%p382_p10), 125952  }
  0x18   : > { %385 = sbr.rel (%p382_p10) target bundleno = 439 (0x1b7), region = 52  ;;  %979 = vmatprep.subr.bf16.mxu0 (!%p382_p10), %v1218_v1  ;;  %987 = vmatprep.subr.bf16.mxu1 (!%p382_p10), %v1218_v1  ;;  %p447_p11 = scmp.lt.s32.totalorder (!%p382_p10), %s1208_s16, 1  ;;  %vm653_vm3 = vcmask (!%p382_p10), 31744   ;;  %vm655_vm4 = vcmask (!%p382_p10), 64512   ;;  %vm657_vm5 = vcmask (!%p382_p10), 97280   ;;  %vm659_vm6 = vcmask (!%p382_p10), 130048  }
  0x19   : > { %983 = vmatprep.mubr.msk.bf16.mxu0 (!%p382_p10), %vm1219_vm0, %v1218_v1  ;;  %991 = vmatprep.mubr.msk.bf16.mxu1 (!%p382_p10), %vm1219_vm0, %v1218_v1  ;;  %s1541_s3 = sld [smem:[#allocation12_spill]] (!%p382_p10)  ;;  %s1542_s0 = sld [smem:[#allocation9_spill]] (!%p382_p10)  ;;  %v673_v26 = vld [vmem:[%s1522_s6] sm:$0xff] (!%p382_p10)  ;;  %vm661_vm7 = vcmask (!%p382_p10), 162816   ;;  %vm663_vm8 = vcmask (!%p382_p10), 195584   ;;  %vm665_vm9 = vcmask (!%p382_p10), 228352  }
  0x1a   : > { %v674_v27 = vld [vmem:[%s1523_s7] sm:$0xff] (!%p382_p10)  ;;  %s1543_s4 = sld [smem:[#allocation13_spill]] (!%p382_p10)  ;;  %s1544_s5 = sld [smem:[#allocation14_spill]] (!%p382_p10)  ;;  %vm671_vm10 = vcmask (!%p382_p10), 257024  }
  0x1b   : > { %s965_s24 = sshll.u32 (!%p382_p10), %s1208_s16, 6 }
  0x1d   : > { %v1072_v0 = vld [vmem:[%s1539_s1] sm:$0xff] (!%p382_p10)   ;;  %v1074_v3 = vld [vmem:[%s1539_s1 + $0x8] sm:$0xff] (!%p382_p10)   ;;  %s1397_s1 = scalar_lea.hbm (!%p382_p10), %s1525_s9, %s965_s24 }
  0x1e   : > { %v1073_v2 = vld [vmem:[%s1540_s2] sm:$0xff] (!%p382_p10)   ;;  %980 = vmatpush3.bf16.msra.mxu0 (!%p382_p10), %v1072_v0  ;;  %v1075_v4 = vld [vmem:[%s1540_s2 + $0x8] sm:$0xff] (!%p382_p10)   ;;  %s1407_s2 = scalar_lea.hbm (!%p382_p10), %s1526_s10, %s965_s24 }
  0x1f   : > { %988 = vmatpush3.bf16.msra.mxu1 %v1073_v2  ;;  %981 = vmatprep.subr.bf16.mxu0 %v1218_v1  ;;  %s448_s27 = scalar_select %p447_p11, %s1208_s16, 1  ;;  %v1076_v5 = vld [vmem:[%s1541_s3] sm:$0xff]   ;;  %v1077_v7 = vld [vmem:[%s1541_s3 + $0x8] sm:$0xff]  }
  0x20   : > { %989 = vmatprep.subr.bf16.mxu1 %v1218_v1  ;;  %v644_v34 = vld [vmem:[%s1543_s4] sm:$0xff]  ;;  %s1222_s16 = smov [#allocation4]  }
  0x21   : > { %s952_s28 = sshll.u32 %s448_s27, 2  ;;  %s1220_s27 = smov 124   ;;  %v645_v37 = vld [vmem:[%s1544_s5] sm:$0xff] }
  0x22   : > { %982 = vmatpush3.bf16.msra.mxu0 %v1074_v3  ;;  %s453_s20 = scalar_lea.vmem %s1542_s0, %s952_s28  ;;  %s1221_s28 = smov 4  }
  0x23   : > { %990 = vmatpush3.bf16.msra.mxu1 %v1075_v4  ;;  %995 = vmatprep.subr.bf16.mxu0 %v1218_v1  ;;  %v471_v6 = vld [vmem:[%s453_s20] sm:$0xf]  ;;  %s1528_s20 = sand.u32 1, %s1200_s14  }
  0x24   : > { %s1368_s29 = sshll.u32 %s1528_s20, 2 }
  0x25   : > { %984 = vmatmul.mubr.msk.bf16.vlgmr.msra.gmra.mrb[0].mxu0 %vm488_vm1, %v471_v6  ;;  %s1529_s30 = scalar_lea.vmem [#allocation6], %s1368_s29  ;;  %s439_s20 = scalar_lea.vmem [#allocation4], %s1368_s29 }
  0x26   : > { %992 = vmatmul.mubr.msk.bf16.vlgmr.msra.gmra.mrb[0].mxu1 %vm488_vm1, %v471_v6  ;;  %996 = vmatpush3.bf16.msra.mxu0 %v1076_v5  ;;  %s1530_s12 = scalar_lea.vmem [#allocation2], %s1368_s29 }
  0x27   : > { %997 = vmatprep.subr.bf16.mxu0 %v1218_v1  ;;  %999 = vmatprep.mubr.msk.bf16.mxu0 %vm1219_vm0, %v1218_v1  ;;  %s718_s22 = sshll.u32 %s1530_s12, 4  ;;  %s1415_s12 = scalar_lea.hbm %s1524_s8, %s965_s24  ;;  %s1417_s22 = int_to_ptr.vmem [resolvable:$true] %s718_s22 }
  0x2a   : > { %998 = vmatpush3.bf16.msra.mxu0 %v1077_v7 }
  0x2d   : > { %1000 = vmatmul.mubr.msk.bf16.vlgmr.msra.gmra.mrb[4].mxu0 %vm488_vm1, %v471_v6 }
  0xf8   : > { %v526_v8 = vpop.f32.mrb[0].mxu0 }
  0xf9   : > { %v582_v9 = vpop.f32.mrb[0].mxu1  ;;  %647 = vrot.lane.b32.xlu0 %v526_v8, %s1220_s27  ;;  %v985_v10 = vpop.f32.mrb[1].mxu0  ;;  %v667_v42 = vmul.f32 %v644_v34, %v526_v8 }
  0xfa   : > { %676 = vrot.lane.b32.xlu1 %v582_v9, %s1220_s27  ;;  %v993_v11 = vpop.f32.mrb[1].mxu1  ;;  %v529_v12 = vpop.f32.mrb[2].mxu0  ;;  %s1382_s27 = sand.u32 1, %s940_s19   ;;  %v685_v35 = vmul.f32 %v673_v26, %v582_v9  ;;  %s1545_s19 = scalar_lea.vmem [#allocation6], %s1368_s29 }
  0xfb   : > { %v585_v13 = vpop.f32.mrb[2].mxu1  ;;  %v986_v14 = vpop.f32.mrb[3].mxu0  ;;  %s746_s0 = sshll.u32 %s1545_s19, 4  ;;  %s699_s3 = scalar_lea.sflag [#allocation5], %s1382_s27  ;;  %s1409_s0 = int_to_ptr.vmem [resolvable:$true] %s746_s0 }
  0xfc   : > { %v994_v15 = vpop.f32.mrb[3].mxu1  ;;  %s1082_s19 = sshll.u32 %s1222_s16, 4  ;;  %s1083_s19 = int_to_ptr.vmem [resolvable:$false] %s1082_s19 }
  0xfd   : > { %650 = vrot.lane.b32.xlu0 %v526_v8, %s1221_s28  ;;  %s1084_s5 = scalar_lea.vmem %s1083_s19, 128 }
  0xfe   : > { %679 = vrot.lane.b32.xlu1 %v582_v9, %s1221_s28 }
 0x100   : > { %v638_v16 = vpop.f32.mrb[4].mxu0 }
 0x101   : > { %v691_v17 = vpack.c.bf16 %v638_v16, %v638_v16  ;;  %v1001_v18 = vpop.f32.mrb[5].mxu0 }
 0x102   : > { %v641_v19 = vpop.f32.mrb[6].mxu0 }
 0x103   : > { %692 = vst.msk [vmem:[%s1529_s30] sm:$0xf] %vm689_vm2, %v691_v17  ;;  %v1002_v20 = vpop.f32.mrb[7].mxu0  ;;  %s732_s30 = sshll.u32 %s439_s20, 4  ;;  %s1402_s30 = int_to_ptr.vmem [resolvable:$true] %s732_s30 }
 0x104   : > { %s1078_s4 = scalar_lea.vmem %s1402_s30, 64  ;;  %p1085_p1 = scmp.lt.s32.totalorder %s1402_s30, %s1083_s19 }
 0x105   : > { %p1079_p12 = scmp.ne.s32.totalorder %s1402_s30, %s1078_s4  ;;  %p1086_p2 = scmp.lt.s32.totalorder %s1084_s5, %s1078_s4 }
 0x107   : > { %p1080_p13 = pnand %p1079_p12, %p1322_p4  ;;  %p1087_p3 = por %p1086_p2, %p1085_p1 }
 0x109   : > { %p1081_p0 = pneg %p1080_p13 }
 0x10b   : > { %p1088_p5 = pnand %p1087_p3, %p1081_p0 }
 0x16b   : > { %v648_v21 = vpop.permute.xlu0 %647 }
 0x16c   : > { %v677_v22 = vpop.permute.xlu1 %676 }
 0x16f   : > { %v651_v23 = vpop.permute.xlu0 %650 }
 0x170   : > { %v680_v24 = vpop.permute.xlu1 %679  ;;  %v654_v25 = vsel %vm653_vm3, %v648_v21, %v651_v23 }
 0x171   : > { %v682_v28 = vsel %vm653_vm3, %v677_v22, %v680_v24  ;;  %v656_v29 = vsel %vm655_vm4, %v654_v25, %v648_v21 }
 0x172   : > { %v683_v30 = vsel %vm655_vm4, %v682_v28, %v677_v22  ;;  %v658_v31 = vsel %vm657_vm5, %v656_v29, %v651_v23 }
 0x173   : > { %v684_v32 = vsel %vm657_vm5, %v683_v30, %v680_v24  ;;  %v660_v33 = vsel %vm659_vm6, %v658_v31, %v648_v21 }
 0x174   : > { %v686_v36 = vmul.f32 %v684_v32, %v674_v27  ;;  %v662_v38 = vsel %vm661_vm7, %v660_v33, %v651_v23 }
 0x175   : > { %v664_v39 = vsel %vm663_vm8, %v662_v38, %v648_v21 }
 0x176   : > { %v687_v40 = vadd.f32 %v686_v36, %v685_v35  ;;  %v666_v41 = vsel %vm665_vm9, %v664_v39, %v651_v23 }
 0x177   : > { %v668_v43 = vmul.f32 %v666_v41, %v645_v37 }
 0x178   : > { %v688_v44 = vpack.c.bf16 %v687_v40, %v687_v40 }
 0x179   : > { %v669_v45 = vadd.f32 %v668_v43, %v667_v42 }
 0x17a   : > { %690 = vst.msk [vmem:[%s439_s20] sm:$0xf] %vm689_vm2, %v688_v44 }
 0x17b   : > { %v670_v46 = vpack.c.bf16 %v669_v45, %v669_v45 }
 0x17c   : > { %1091 = shalt.err (!%p1088_p5)
}
 0x17d   : > { %s1092_s20 = scalar_lea.hbm %s1397_s1, 64  ;;  %s1096_s11 = scalar_lea.hbm %s1525_s9, 128 }
 0x17e   : > { %p1093_p6 = scmp.ne.s32.totalorder %s1397_s1, %s1092_s20  ;;  %p1097_p10 = scmp.lt.u32.totalorder %s1397_s1, %s1525_s9 }
 0x17f   : > { %p1098_p11 = scmp.lt.u32.totalorder %s1096_s11, %s1092_s20  ;;  %p1100_p13 = scmp.lt.u32.totalorder %s1092_s20, %s1397_s1 }
 0x180   : > { %p1094_p7 = pnand %p1093_p6, %p1322_p4 }
 0x181   : > { %p1099_p12 = por %p1098_p11, %p1097_p10 }
 0x182   : > { %p1095_p9 = pneg %p1094_p7 }
 0x183   : > { %p1101_p0 = por %p1100_p13, %p1099_p12 }
 0x185   : > { %p1102_p1 = pnand %p1101_p0, %p1095_p9 }
 0x187   : > { %1105 = shalt.err (!%p1102_p1)
}
 0x188   : > { %1004 = dma.vmem_to_hbm [thread:$0]  (%p1322_p4), %s1402_s30, 64, %s1397_s1, %s699_s3  }
 0x189   : > { %s1106_s4 = scalar_lea.vmem %s1409_s0, 64  ;;  %s1223_s5 = smov [#allocation6]  }
 0x18a   : > { %p1107_p2 = scmp.ne.s32.totalorder %s1409_s0, %s1106_s4  ;;  %s1110_s20 = sshll.u32 %s1223_s5, 4  ;;  %s1111_s20 = int_to_ptr.vmem [resolvable:$false] %s1110_s20 }
 0x18b   : > { %s1112_s24 = scalar_lea.vmem %s1111_s20, 128  ;;  %p1113_p6 = scmp.lt.s32.totalorder %s1409_s0, %s1111_s20 }
 0x18c   : > { %p1108_p3 = pnand %p1107_p2, %p1322_p4  ;;  %p1114_p7 = scmp.lt.s32.totalorder %s1112_s24, %s1106_s4 }
 0x18e   : > { %p1109_p5 = pneg %p1108_p3  ;;  %p1115_p9 = por %p1114_p7, %p1113_p6 }
 0x190   : > { %p1116_p10 = pnand %p1115_p9, %p1109_p5 }
 0x192   : > { %1119 = shalt.err (!%p1116_p10)
}
 0x193   : > { %s1120_s1 = scalar_lea.hbm %s1407_s2, 64  ;;  %s1124_s11 = scalar_lea.hbm %s1526_s10, 128 }
 0x194   : > { %p1121_p11 = scmp.ne.s32.totalorder %s1407_s2, %s1120_s1  ;;  %p1125_p0 = scmp.lt.u32.totalorder %s1407_s2, %s1526_s10 }
 0x195   : > { %p1126_p1 = scmp.lt.u32.totalorder %s1124_s11, %s1120_s1  ;;  %p1128_p3 = scmp.lt.u32.totalorder %s1120_s1, %s1407_s2 }
 0x196   : > { %p1122_p12 = pnand %p1121_p11, %p1322_p4 }
 0x197   : > { %p1127_p2 = por %p1126_p1, %p1125_p0 }
 0x198   : > { %p1123_p13 = pneg %p1122_p12 }
 0x199   : > { %p1129_p5 = por %p1128_p3, %p1127_p2 }
 0x19b   : > { %p1130_p6 = pnand %p1129_p5, %p1123_p13 }
 0x19d   : > { %1133 = shalt.err (!%p1130_p6)
}
 0x19e   : > { %1005 = dma.vmem_to_hbm [thread:$0]  (%p1322_p4), %s1409_s0, 64, %s1407_s2, %s699_s3  }
 0x19f   : > { %s1546_s4 = scalar_lea.vmem [#allocation2], %s1368_s29  ;;  %s1547_s5 = sand.u32 1, %s1200_s14  }
 0x1a0   : > { %672 = vst.msk [vmem:[%s1546_s4] sm:$0xf] %vm671_vm10, %v670_v46  ;;  %s694_s20 = scalar_lea.sflag [#allocation3], %s1547_s5  ;;  %s1134_s24 = scalar_lea.vmem %s1417_s22, 64 }
 0x1a1   : > { %p1135_p7 = scmp.ne.s32.totalorder %s1417_s22, %s1134_s24  ;;  %s1224_s27 = smov [#allocation2]  }
 0x1a2   : > { %s1138_s1 = sshll.u32 %s1224_s27, 4  ;;  %s1139_s1 = int_to_ptr.vmem [resolvable:$false] %s1138_s1 }
 0x1a3   : > { %p1136_p9 = pnand %p1135_p7, %p1322_p4  ;;  %s1140_s30 = scalar_lea.vmem %s1139_s1, 128 }
 0x1a4   : > { %p1141_p11 = scmp.lt.s32.totalorder %s1417_s22, %s1139_s1  ;;  %p1142_p12 = scmp.lt.s32.totalorder %s1140_s30, %s1134_s24 }
 0x1a5   : > { %p1137_p10 = pneg %p1136_p9 }
 0x1a6   : > { %p1143_p13 = por %p1142_p12, %p1141_p11 }
 0x1a8   : > { %p1144_p0 = pnand %p1143_p13, %p1137_p10 }
 0x1aa   : > { %1147 = shalt.err (!%p1144_p0)
}
 0x1ab   : > { %s1148_s0 = scalar_lea.hbm %s1415_s12, 64  ;;  %s1152_s29 = scalar_lea.hbm %s1524_s8, 128 }
 0x1ac   : > { %p1149_p1 = scmp.ne.s32.totalorder %s1415_s12, %s1148_s0  ;;  %p1153_p5 = scmp.lt.u32.totalorder %s1415_s12, %s1524_s8 }
 0x1ad   : > { %p1154_p6 = scmp.lt.u32.totalorder %s1152_s29, %s1148_s0  ;;  %p1156_p9 = scmp.lt.u32.totalorder %s1148_s0, %s1415_s12 }
 0x1ae   : > { %p1150_p2 = pnand %p1149_p1, %p1322_p4 }
 0x1af   : > { %p1155_p7 = por %p1154_p6, %p1153_p5 }
 0x1b0   : > { %p1151_p3 = pneg %p1150_p2 }
 0x1b1   : > { %p1157_p10 = por %p1156_p9, %p1155_p7 }
 0x1b3   : > { %p1158_p11 = pnand %p1157_p10, %p1151_p3 }
 0x1b5   : > { %1161 = shalt.err (!%p1158_p11)
}
 0x1b6   : > { %1003 = dma.vmem_to_hbm [thread:$0]  (%p1322_p4), %s1417_s22, 64, %s1415_s12, %s694_s20  }
 0x1b7 PF: > { %p1019_p12 = scmp.ge.s32.totalorder %s1216_s18, 2  ;;  %s758_s16 = sand.u32 1, %s1196_s13  }
 0x1b8   : > { %s759_s19 = scalar_lea.sflag [#allocation3], %s758_s16 }
 0x1b9   : > { %p1010_p13 = pnand %p1019_p12, %p1331_p8 }
 0x1bb   : > { %1187 = dma.done.wait (!%p1010_p13), %s759_s19, 64  }
 0x1bc   : > { %1189 = vsyncadd (!%p1010_p13), %s759_s19, 4294967232  ;;  %s1548_s4 = sadd.s32 4294967294, %s1216_s18  }
 0x1bd   : > { %s767_s5 = sand.u32 1, %s1548_s4  }
 0x1be   : > { %s768_s24 = scalar_lea.sflag [#allocation5], %s767_s5 }
 0x1bf   : > { %1191 = dma.done.wait (!%p1010_p13), %s768_s24, 128  }
 0x1c0   : > { %1193 = vsyncadd (!%p1010_p13), %s768_s24, 4294967168  ;;  %s27_s18 = sadd.s32 1, %s1216_s18   ;;  %s1549_s13 = smov %s1200_s14 }
 0x1c1   : > { %p24_p4 = scmp.ge.s32.totalorder %s27_s18, 4   ;;  %s1550_s14 = smov %s1204_s15 }
 0x1c2   : > { %s1551_s15 = smov %s1337_s26  ;;  %s1552_s16 = smov %s1212_s17 }
 0x1c3   : > { %s1553_s17 = smov %s1555_s21  ;;  %26 = sbr.rel (!%p24_p4) target bundleno = 13 (0xd), region = 131 }
 0x1ca   :  { %782 = vsyncpa [#allocation3], 1 }
 0x1cb   :  { %784 = vsyncpa [#allocation3 + $0x1], 1 }
 0x1cc   :  { %785 = vsyncpa [#allocation5], 1 }
 0x1cd   :  { %787 = vsyncpa [#allocation5 + $0x1], 1 }

</bundles_post_ra>
